<compile_context>
chip_gen: v5e
topology: v5e:2x2
jax: 0.10.0
libtpu: 0.0.40
codegen_flags: <defaults>
</compile_context>

<pallas_src>
import functools

import jax
import jax.numpy as jnp
import numpy as np
from jax import lax
from jax.experimental import pallas as pl
from jax.experimental.pallas import tpu as pltpu


# ----------------------------------------------------------------------------
# Fused Pallas kernel: QKV linear -> multi-head attention -> output projection
# ----------------------------------------------------------------------------
def _eva_attn_fused_kernel(x_ref, wqkv_ref, bqkv_ref, wproj_ref, bproj_ref,
                           o_ref, *, batch, seq, num_heads, head_dim):
    """Single-step fused kernel.

    x_ref     : (B*N, C)    bf16  (flattened batch*tokens rows)
    wqkv_ref  : (C, 3*ahd)  bf16  (q columns pre-scaled by head_dim**-0.5)
    bqkv_ref  : (1, 3*ahd)  f32   (q part pre-scaled)
    wproj_ref : (ahd, C)    bf16
    bproj_ref : (1, C)      f32
    o_ref     : (B*N, C)    f32
    """
    ahd = num_heads * head_dim
    out_dim = o_ref.shape[-1]

    # Fused QKV projection for ALL B*N rows at once (bf16 MXU, f32 accumulation).
    qkv = jnp.dot(x_ref[...], wqkv_ref[...],
                  preferred_element_type=jnp.float32) + bqkv_ref[...]

    # Per-batch, per-head attention, statically unrolled (tiny toy sizes).
    for b in range(batch):
        r0 = b * seq
        acc = jnp.zeros((seq, out_dim), jnp.float32)
        for h in range(num_heads):
            c0 = h * head_dim
            q = qkv[r0:r0 + seq, c0:c0 + head_dim]                      # (N, hd), pre-scaled
            k = qkv[r0:r0 + seq, ahd + c0:ahd + c0 + head_dim]          # (N, hd)
            v = qkv[r0:r0 + seq, 2 * ahd + c0:2 * ahd + c0 + head_dim]  # (N, hd)

            # q . k^T: contract the last axis of both operands directly
            # (no in-kernel k.T relayout); bf16 MXU operands, f32 accumulation.
            s = lax.dot_general(q.astype(jnp.bfloat16), k.astype(jnp.bfloat16),
                                (((1,), (1,)), ((), ())),
                                preferred_element_type=jnp.float32)     # (N, N)

            # Softmax in f32; approx reciprocal goes to the EUP (free slot).
            s = s - jnp.max(s, axis=-1, keepdims=True)
            p = jnp.exp(s)
            p = p * pl.reciprocal(jnp.sum(p, axis=-1, keepdims=True), approx=True)

            o_h = jnp.dot(p.astype(jnp.bfloat16), v.astype(jnp.bfloat16),
                          preferred_element_type=jnp.float32)            # (N, hd)

            # Per-head partial output projection: accumulate o_h @ w_proj[h*hd:(h+1)*hd]
            # instead of lane-concatenating head outputs (deletes the XLU concat).
            acc = acc + jnp.dot(o_h.astype(jnp.bfloat16),
                                wproj_ref[c0:c0 + head_dim, :],
                                preferred_element_type=jnp.float32)

        # norm = Identity; + proj bias; dropout p=0.
        # TODO(synk): out last dim C=32 < 128 lowers to masked vst.msk stores; at
        #   production C (>=768) the store is naturally lane-dense. At this toy
        #   size an in-kernel (N,C)->(1,N*C) relayout would cost as much as the
        #   masked store, so it is intentionally not done here.
        o_ref[r0:r0 + seq, :] = (acc + bproj_ref[...]).astype(o_ref.dtype)


# ----------------------------------------------------------------------------
# Wrapper
# ----------------------------------------------------------------------------
def eva_attention_forward(x, params, num_heads, rope=None, attn_mask=None):
    if rope is not None or attn_mask is not None:
        # TODO(synk): rope / attn_mask paths are not implemented in the kernel.
        raise NotImplementedError("rope / attn_mask are not supported by this kernel")

    B, N, C = x.shape
    all_head_dim = params["w_qkv"].shape[1] // 3
    head_dim = all_head_dim // num_heads
    scale = head_dim ** (-0.5)

    # Fold the attention scale into the q slice of the QKV weight / bias
    # (host-side, exact same math): q leaves the QKV matmul already scaled.
    w_qkv = params["w_qkv"]
    w_qkv = jnp.concatenate(
        [w_qkv[:, :all_head_dim] * scale, w_qkv[:, all_head_dim:]], axis=1)
    # qkv_bias = cat(q_bias * scale, k_bias (zero buffer), v_bias) — as in the module.
    qkv_bias = jnp.concatenate(
        [params["q_bias"] * scale, params["k_bias"], params["v_bias"]]
    ).astype(jnp.float32).reshape(1, -1)
    b_proj = params["b_proj"].astype(jnp.float32).reshape(1, -1)

    # bf16 MXU operands; biases stay f32 (added after f32 accumulation).
    x_rows = x.reshape(B * N, C).astype(jnp.bfloat16)
    w_qkv = w_qkv.astype(jnp.bfloat16)
    w_proj = params["w_proj"].astype(jnp.bfloat16)

    kernel = functools.partial(_eva_attn_fused_kernel, batch=B, seq=N,
                               num_heads=num_heads, head_dim=head_dim)

    vmem = pl.BlockSpec(memory_space=pltpu.MemorySpace.VMEM)
    out = pl.pallas_call(
        kernel,
        out_shape=jax.ShapeDtypeStruct((B * N, C), jnp.float32),
        # Single step (no grid): every operand is one whole VMEM-resident block.
        in_specs=[vmem, vmem, vmem, vmem, vmem],
        out_specs=vmem,
    )(x_rows, w_qkv, qkv_bias, w_proj, b_proj)

    return out.reshape(B, N, C).astype(x.dtype)


# ----------------------------------------------------------------------------
# Pure-JAX reference (mirrors the PyTorch module, full f32)
# ----------------------------------------------------------------------------
def eva_attention_ref(x, params, num_heads):
    B, N, C = x.shape
    all_head_dim = params["w_qkv"].shape[1] // 3
    head_dim = all_head_dim // num_heads
    scale = head_dim ** (-0.5)
    qkv_bias = jnp.concatenate(
        [params["q_bias"], params["k_bias"], params["v_bias"]])
    qkv = x @ params["w_qkv"] + qkv_bias
    qkv = qkv.reshape(B, N, 3, num_heads, head_dim)
    qkv = jnp.transpose(qkv, (2, 0, 3, 1, 4))
    q, k, v = qkv[0], qkv[1], qkv[2]
    attn = jax.nn.softmax((q * scale) @ jnp.swapaxes(k, -2, -1), axis=-1)
    o = attn @ v
    o = jnp.transpose(o, (0, 2, 1, 3)).reshape(B, N, all_head_dim)
    return o @ params["w_proj"] + params["b_proj"]


# ----------------------------------------------------------------------------
if __name__ == "__main__":
    # Small, module-consistent shapes.
    B, N, dim = 2, 8, 32
    num_heads = 4
    head_dim = dim // num_heads
    all_head_dim = head_dim * num_heads
    dtype = jnp.float32

    key = jax.random.PRNGKey(0)
    kx, kw1, kb_q, kb_v, kw2, kb2 = jax.random.split(key, 6)

    x = jax.random.normal(kx, (B, N, dim), dtype=dtype)

    params = {
        # nn.Linear(dim, 3*all_head_dim, bias=False) weight is (out, in) in torch;
        # stored here already transposed as (in, out) for x @ w.
        "w_qkv": (jax.random.normal(kw1, (dim, 3 * all_head_dim), dtype=dtype)
                  * 0.05),
        "q_bias": jax.random.normal(kb_q, (all_head_dim,), dtype=dtype) * 0.05,
        "k_bias": jnp.zeros((all_head_dim,), dtype=dtype),  # zero buffer
        "v_bias": jax.random.normal(kb_v, (all_head_dim,), dtype=dtype) * 0.05,
        # proj: nn.Linear(all_head_dim, dim)
        "w_proj": (jax.random.normal(kw2, (all_head_dim, dim), dtype=dtype)
                   * 0.05),
        "b_proj": jax.random.normal(kb2, (dim,), dtype=dtype) * 0.05,
    }

    out = jax.block_until_ready(eva_attention_forward(x, params, num_heads))

    ref = eva_attention_ref(x, params, num_heads)
    # Tolerance widened vs pure-f32: MXU operands are bf16 (f32 accumulation) and
    # the softmax denominator uses pl.reciprocal(approx=True). Observed error is
    # well under these bounds for the 0.05-scaled weights used here.
    np.testing.assert_allclose(np.asarray(out), np.asarray(ref),
                               rtol=2e-2, atol=2e-3)
    assert out.shape == (B, N, dim)
    print("KERNEL_OK")
</pallas_src>

<mosaic_0001>
module attributes {stable_mosaic.version = 11 : i64} {
  func.func @_eva_attn_fused_kernel(%arg0: memref<16x32xbf16, #tpu.memory_space<vmem>>, %arg1: memref<32x96xbf16, #tpu.memory_space<vmem>>, %arg2: memref<1x96xf32, #tpu.memory_space<vmem>>, %arg3: memref<32x32xbf16, #tpu.memory_space<vmem>>, %arg4: memref<1x32xf32, #tpu.memory_space<vmem>>, %arg5: memref<16x32xf32, #tpu.memory_space<vmem>>) attributes {dimension_semantics = [], scalar_prefetch = 0 : i64, scratch_operands = 0 : i64, tpu.core_type = #tpu.core_type<tc>} {
    %c0 = arith.constant 0 : index
    %c0_0 = arith.constant 0 : index
    %0 = vector.load %arg0[%c0, %c0_0] : memref<16x32xbf16, #tpu.memory_space<vmem>>, vector<16x32xbf16>
    %c0_1 = arith.constant 0 : index
    %c0_2 = arith.constant 0 : index
    %1 = vector.load %arg1[%c0_1, %c0_2] : memref<32x96xbf16, #tpu.memory_space<vmem>>, vector<32x96xbf16>
    %cst = arith.constant dense<0.000000e+00> : vector<16x96xf32>
    %2 = tpu.matmul %0, %1, %cst {dimension_numbers = #tpu.dot_dimension_numbers<[1], [0], [0], [1], [0, 0, 1, 1], [], []>} : vector<16x32xbf16>, vector<32x96xbf16>, vector<16x96xf32> -> vector<16x96xf32>
    %c0_3 = arith.constant 0 : index
    %c0_4 = arith.constant 0 : index
    %3 = vector.load %arg2[%c0_3, %c0_4] : memref<1x96xf32, #tpu.memory_space<vmem>>, vector<1x96xf32>
    %4 = vector.broadcast %3 : vector<1x96xf32> to vector<16x96xf32>
    %5 = arith.addf %2, %4 : vector<16x96xf32>
    %cst_5 = arith.constant 0.000000e+00 : f32
    %6 = vector.broadcast %cst_5 : f32 to vector<8x32xf32>
    %7 = vector.extract_strided_slice %5 {offsets = [0, 0], sizes = [8, 8], strides = [1, 1]} : vector<16x96xf32> to vector<8x8xf32>
    %8 = vector.extract_strided_slice %5 {offsets = [0, 32], sizes = [8, 8], strides = [1, 1]} : vector<16x96xf32> to vector<8x8xf32>
    %9 = vector.extract_strided_slice %5 {offsets = [0, 64], sizes = [8, 8], strides = [1, 1]} : vector<16x96xf32> to vector<8x8xf32>
    %10 = arith.truncf %7 : vector<8x8xf32> to vector<8x8xbf16>
    %11 = arith.truncf %8 : vector<8x8xf32> to vector<8x8xbf16>
    %cst_6 = arith.constant dense<0.000000e+00> : vector<8x8xf32>
    %12 = tpu.matmul %10, %11, %cst_6 {dimension_numbers = #tpu.dot_dimension_numbers<[1], [1], [0], [0], [0, 0, 1, 0], [], []>} : vector<8x8xbf16>, vector<8x8xbf16>, vector<8x8xf32> -> vector<8x8xf32>
    %cst_7 = arith.constant dense<0xFF800000> : vector<8xf32>
    %13 = vector.multi_reduction <maximumf>, %12, %cst_7 [1] : vector<8x8xf32> to vector<8xf32>
    %14 = vector.shape_cast %13 : vector<8xf32> to vector<8x1xf32>
    %15 = vector.broadcast %14 : vector<8x1xf32> to vector<8x8xf32>
    %16 = arith.subf %12, %15 : vector<8x8xf32>
    %17 = math.exp %16 : vector<8x8xf32>
    %cst_8 = arith.constant dense<0.000000e+00> : vector<8xf32>
    %18 = vector.multi_reduction <add>, %17, %cst_8 [1] : vector<8x8xf32> to vector<8xf32>
    %19 = vector.shape_cast %18 : vector<8xf32> to vector<8x1xf32>
    %20 = tpu.reciprocal %19 {approx = true} : vector<8x1xf32> -> vector<8x1xf32>
    %21 = vector.broadcast %20 : vector<8x1xf32> to vector<8x8xf32>
    %22 = arith.mulf %17, %21 : vector<8x8xf32>
    %23 = arith.truncf %22 : vector<8x8xf32> to vector<8x8xbf16>
    %24 = arith.truncf %9 : vector<8x8xf32> to vector<8x8xbf16>
    %cst_9 = arith.constant dense<0.000000e+00> : vector<8x8xf32>
    %25 = tpu.matmul %23, %24, %cst_9 {dimension_numbers = #tpu.dot_dimension_numbers<[1], [0], [0], [1], [0, 0, 1, 1], [], []>} : vector<8x8xbf16>, vector<8x8xbf16>, vector<8x8xf32> -> vector<8x8xf32>
    %26 = arith.truncf %25 : vector<8x8xf32> to vector<8x8xbf16>
    %c0_10 = arith.constant 0 : index
    %c0_11 = arith.constant 0 : index
    %27 = vector.load %arg3[%c0_10, %c0_11] : memref<32x32xbf16, #tpu.memory_space<vmem>>, vector<8x32xbf16>
    %cst_12 = arith.constant dense<0.000000e+00> : vector<8x32xf32>
    %28 = tpu.matmul %26, %27, %cst_12 {dimension_numbers = #tpu.dot_dimension_numbers<[1], [0], [0], [1], [0, 0, 1, 1], [], []>} : vector<8x8xbf16>, vector<8x32xbf16>, vector<8x32xf32> -> vector<8x32xf32>
    %29 = arith.addf %6, %28 : vector<8x32xf32>
    %30 = vector.extract_strided_slice %5 {offsets = [0, 8], sizes = [8, 8], strides = [1, 1]} : vector<16x96xf32> to vector<8x8xf32>
    %31 = vector.extract_strided_slice %5 {offsets = [0, 40], sizes = [8, 8], strides = [1, 1]} : vector<16x96xf32> to vector<8x8xf32>
    %32 = vector.extract_strided_slice %5 {offsets = [0, 72], sizes = [8, 8], strides = [1, 1]} : vector<16x96xf32> to vector<8x8xf32>
    %33 = arith.truncf %30 : vector<8x8xf32> to vector<8x8xbf16>
    %34 = arith.truncf %31 : vector<8x8xf32> to vector<8x8xbf16>
    %cst_13 = arith.constant dense<0.000000e+00> : vector<8x8xf32>
    %35 = tpu.matmul %33, %34, %cst_13 {dimension_numbers = #tpu.dot_dimension_numbers<[1], [1], [0], [0], [0, 0, 1, 0], [], []>} : vector<8x8xbf16>, vector<8x8xbf16>, vector<8x8xf32> -> vector<8x8xf32>
    %cst_14 = arith.constant dense<0xFF800000> : vector<8xf32>
    %36 = vector.multi_reduction <maximumf>, %35, %cst_14 [1] : vector<8x8xf32> to vector<8xf32>
    %37 = vector.shape_cast %36 : vector<8xf32> to vector<8x1xf32>
    %38 = vector.broadcast %37 : vector<8x1xf32> to vector<8x8xf32>
    %39 = arith.subf %35, %38 : vector<8x8xf32>
    %40 = math.exp %39 : vector<8x8xf32>
    %cst_15 = arith.constant dense<0.000000e+00> : vector<8xf32>
    %41 = vector.multi_reduction <add>, %40, %cst_15 [1] : vector<8x8xf32> to vector<8xf32>
    %42 = vector.shape_cast %41 : vector<8xf32> to vector<8x1xf32>
    %43 = tpu.reciprocal %42 {approx = true} : vector<8x1xf32> -> vector<8x1xf32>
    %44 = vector.broadcast %43 : vector<8x1xf32> to vector<8x8xf32>
    %45 = arith.mulf %40, %44 : vector<8x8xf32>
    %46 = arith.truncf %45 : vector<8x8xf32> to vector<8x8xbf16>
    %47 = arith.truncf %32 : vector<8x8xf32> to vector<8x8xbf16>
    %cst_16 = arith.constant dense<0.000000e+00> : vector<8x8xf32>
    %48 = tpu.matmul %46, %47, %cst_16 {dimension_numbers = #tpu.dot_dimension_numbers<[1], [0], [0], [1], [0, 0, 1, 1], [], []>} : vector<8x8xbf16>, vector<8x8xbf16>, vector<8x8xf32> -> vector<8x8xf32>
    %49 = arith.truncf %48 : vector<8x8xf32> to vector<8x8xbf16>
    %c8 = arith.constant 8 : index
    %c0_17 = arith.constant 0 : index
    %50 = vector.load %arg3[%c8, %c0_17] : memref<32x32xbf16, #tpu.memory_space<vmem>>, vector<8x32xbf16>
    %cst_18 = arith.constant dense<0.000000e+00> : vector<8x32xf32>
    %51 = tpu.matmul %49, %50, %cst_18 {dimension_numbers = #tpu.dot_dimension_numbers<[1], [0], [0], [1], [0, 0, 1, 1], [], []>} : vector<8x8xbf16>, vector<8x32xbf16>, vector<8x32xf32> -> vector<8x32xf32>
    %52 = arith.addf %29, %51 : vector<8x32xf32>
    %53 = vector.extract_strided_slice %5 {offsets = [0, 16], sizes = [8, 8], strides = [1, 1]} : vector<16x96xf32> to vector<8x8xf32>
    %54 = vector.extract_strided_slice %5 {offsets = [0, 48], sizes = [8, 8], strides = [1, 1]} : vector<16x96xf32> to vector<8x8xf32>
    %55 = vector.extract_strided_slice %5 {offsets = [0, 80], sizes = [8, 8], strides = [1, 1]} : vector<16x96xf32> to vector<8x8xf32>
    %56 = arith.truncf %53 : vector<8x8xf32> to vector<8x8xbf16>
    %57 = arith.truncf %54 : vector<8x8xf32> to vector<8x8xbf16>
    %cst_19 = arith.constant dense<0.000000e+00> : vector<8x8xf32>
    %58 = tpu.matmul %56, %57, %cst_19 {dimension_numbers = #tpu.dot_dimension_numbers<[1], [1], [0], [0], [0, 0, 1, 0], [], []>} : vector<8x8xbf16>, vector<8x8xbf16>, vector<8x8xf32> -> vector<8x8xf32>
    %cst_20 = arith.constant dense<0xFF800000> : vector<8xf32>
    %59 = vector.multi_reduction <maximumf>, %58, %cst_20 [1] : vector<8x8xf32> to vector<8xf32>
    %60 = vector.shape_cast %59 : vector<8xf32> to vector<8x1xf32>
    %61 = vector.broadcast %60 : vector<8x1xf32> to vector<8x8xf32>
    %62 = arith.subf %58, %61 : vector<8x8xf32>
    %63 = math.exp %62 : vector<8x8xf32>
    %cst_21 = arith.constant dense<0.000000e+00> : vector<8xf32>
    %64 = vector.multi_reduction <add>, %63, %cst_21 [1] : vector<8x8xf32> to vector<8xf32>
    %65 = vector.shape_cast %64 : vector<8xf32> to vector<8x1xf32>
    %66 = tpu.reciprocal %65 {approx = true} : vector<8x1xf32> -> vector<8x1xf32>
    %67 = vector.broadcast %66 : vector<8x1xf32> to vector<8x8xf32>
    %68 = arith.mulf %63, %67 : vector<8x8xf32>
    %69 = arith.truncf %68 : vector<8x8xf32> to vector<8x8xbf16>
    %70 = arith.truncf %55 : vector<8x8xf32> to vector<8x8xbf16>
    %cst_22 = arith.constant dense<0.000000e+00> : vector<8x8xf32>
    %71 = tpu.matmul %69, %70, %cst_22 {dimension_numbers = #tpu.dot_dimension_numbers<[1], [0], [0], [1], [0, 0, 1, 1], [], []>} : vector<8x8xbf16>, vector<8x8xbf16>, vector<8x8xf32> -> vector<8x8xf32>
    %72 = arith.truncf %71 : vector<8x8xf32> to vector<8x8xbf16>
    %c16 = arith.constant 16 : index
    %c0_23 = arith.constant 0 : index
    %73 = vector.load %arg3[%c16, %c0_23] : memref<32x32xbf16, #tpu.memory_space<vmem>>, vector<8x32xbf16>
    %cst_24 = arith.constant dense<0.000000e+00> : vector<8x32xf32>
    %74 = tpu.matmul %72, %73, %cst_24 {dimension_numbers = #tpu.dot_dimension_numbers<[1], [0], [0], [1], [0, 0, 1, 1], [], []>} : vector<8x8xbf16>, vector<8x32xbf16>, vector<8x32xf32> -> vector<8x32xf32>
    %75 = arith.addf %52, %74 : vector<8x32xf32>
    %76 = vector.extract_strided_slice %5 {offsets = [0, 24], sizes = [8, 8], strides = [1, 1]} : vector<16x96xf32> to vector<8x8xf32>
    %77 = vector.extract_strided_slice %5 {offsets = [0, 56], sizes = [8, 8], strides = [1, 1]} : vector<16x96xf32> to vector<8x8xf32>
    %78 = vector.extract_strided_slice %5 {offsets = [0, 88], sizes = [8, 8], strides = [1, 1]} : vector<16x96xf32> to vector<8x8xf32>
    %79 = arith.truncf %76 : vector<8x8xf32> to vector<8x8xbf16>
    %80 = arith.truncf %77 : vector<8x8xf32> to vector<8x8xbf16>
    %cst_25 = arith.constant dense<0.000000e+00> : vector<8x8xf32>
    %81 = tpu.matmul %79, %80, %cst_25 {dimension_numbers = #tpu.dot_dimension_numbers<[1], [1], [0], [0], [0, 0, 1, 0], [], []>} : vector<8x8xbf16>, vector<8x8xbf16>, vector<8x8xf32> -> vector<8x8xf32>
    %cst_26 = arith.constant dense<0xFF800000> : vector<8xf32>
    %82 = vector.multi_reduction <maximumf>, %81, %cst_26 [1] : vector<8x8xf32> to vector<8xf32>
    %83 = vector.shape_cast %82 : vector<8xf32> to vector<8x1xf32>
    %84 = vector.broadcast %83 : vector<8x1xf32> to vector<8x8xf32>
    %85 = arith.subf %81, %84 : vector<8x8xf32>
    %86 = math.exp %85 : vector<8x8xf32>
    %cst_27 = arith.constant dense<0.000000e+00> : vector<8xf32>
    %87 = vector.multi_reduction <add>, %86, %cst_27 [1] : vector<8x8xf32> to vector<8xf32>
    %88 = vector.shape_cast %87 : vector<8xf32> to vector<8x1xf32>
    %89 = tpu.reciprocal %88 {approx = true} : vector<8x1xf32> -> vector<8x1xf32>
    %90 = vector.broadcast %89 : vector<8x1xf32> to vector<8x8xf32>
    %91 = arith.mulf %86, %90 : vector<8x8xf32>
    %92 = arith.truncf %91 : vector<8x8xf32> to vector<8x8xbf16>
    %93 = arith.truncf %78 : vector<8x8xf32> to vector<8x8xbf16>
    %cst_28 = arith.constant dense<0.000000e+00> : vector<8x8xf32>
    %94 = tpu.matmul %92, %93, %cst_28 {dimension_numbers = #tpu.dot_dimension_numbers<[1], [0], [0], [1], [0, 0, 1, 1], [], []>} : vector<8x8xbf16>, vector<8x8xbf16>, vector<8x8xf32> -> vector<8x8xf32>
    %95 = arith.truncf %94 : vector<8x8xf32> to vector<8x8xbf16>
    %c24 = arith.constant 24 : index
    %c0_29 = arith.constant 0 : index
    %96 = vector.load %arg3[%c24, %c0_29] : memref<32x32xbf16, #tpu.memory_space<vmem>>, vector<8x32xbf16>
    %cst_30 = arith.constant dense<0.000000e+00> : vector<8x32xf32>
    %97 = tpu.matmul %95, %96, %cst_30 {dimension_numbers = #tpu.dot_dimension_numbers<[1], [0], [0], [1], [0, 0, 1, 1], [], []>} : vector<8x8xbf16>, vector<8x32xbf16>, vector<8x32xf32> -> vector<8x32xf32>
    %98 = arith.addf %75, %97 : vector<8x32xf32>
    %c0_31 = arith.constant 0 : index
    %c0_32 = arith.constant 0 : index
    %99 = vector.load %arg4[%c0_31, %c0_32] : memref<1x32xf32, #tpu.memory_space<vmem>>, vector<1x32xf32>
    %100 = vector.broadcast %99 : vector<1x32xf32> to vector<8x32xf32>
    %101 = arith.addf %98, %100 : vector<8x32xf32>
    %c0_33 = arith.constant 0 : index
    %c0_34 = arith.constant 0 : index
    %102 = vector.load %arg5[%c0_33, %c0_34] : memref<16x32xf32, #tpu.memory_space<vmem>>, vector<8x32xf32>
    tpu.vector_store %arg5[%c0_33, %c0_34], %101 {strides = array<i32>} : memref<16x32xf32, #tpu.memory_space<vmem>>, vector<8x32xf32>,
    %cst_35 = arith.constant 0.000000e+00 : f32
    %103 = vector.broadcast %cst_35 : f32 to vector<8x32xf32>
    %104 = vector.extract_strided_slice %5 {offsets = [8, 0], sizes = [8, 8], strides = [1, 1]} : vector<16x96xf32> to vector<8x8xf32>
    %105 = vector.extract_strided_slice %5 {offsets = [8, 32], sizes = [8, 8], strides = [1, 1]} : vector<16x96xf32> to vector<8x8xf32>
    %106 = vector.extract_strided_slice %5 {offsets = [8, 64], sizes = [8, 8], strides = [1, 1]} : vector<16x96xf32> to vector<8x8xf32>
    %107 = arith.truncf %104 : vector<8x8xf32> to vector<8x8xbf16>
    %108 = arith.truncf %105 : vector<8x8xf32> to vector<8x8xbf16>
    %cst_36 = arith.constant dense<0.000000e+00> : vector<8x8xf32>
    %109 = tpu.matmul %107, %108, %cst_36 {dimension_numbers = #tpu.dot_dimension_numbers<[1], [1], [0], [0], [0, 0, 1, 0], [], []>} : vector<8x8xbf16>, vector<8x8xbf16>, vector<8x8xf32> -> vector<8x8xf32>
    %cst_37 = arith.constant dense<0xFF800000> : vector<8xf32>
    %110 = vector.multi_reduction <maximumf>, %109, %cst_37 [1] : vector<8x8xf32> to vector<8xf32>
    %111 = vector.shape_cast %110 : vector<8xf32> to vector<8x1xf32>
    %112 = vector.broadcast %111 : vector<8x1xf32> to vector<8x8xf32>
    %113 = arith.subf %109, %112 : vector<8x8xf32>
    %114 = math.exp %113 : vector<8x8xf32>
    %cst_38 = arith.constant dense<0.000000e+00> : vector<8xf32>
    %115 = vector.multi_reduction <add>, %114, %cst_38 [1] : vector<8x8xf32> to vector<8xf32>
    %116 = vector.shape_cast %115 : vector<8xf32> to vector<8x1xf32>
    %117 = tpu.reciprocal %116 {approx = true} : vector<8x1xf32> -> vector<8x1xf32>
    %118 = vector.broadcast %117 : vector<8x1xf32> to vector<8x8xf32>
    %119 = arith.mulf %114, %118 : vector<8x8xf32>
    %120 = arith.truncf %119 : vector<8x8xf32> to vector<8x8xbf16>
    %121 = arith.truncf %106 : vector<8x8xf32> to vector<8x8xbf16>
    %cst_39 = arith.constant dense<0.000000e+00> : vector<8x8xf32>
    %122 = tpu.matmul %120, %121, %cst_39 {dimension_numbers = #tpu.dot_dimension_numbers<[1], [0], [0], [1], [0, 0, 1, 1], [], []>} : vector<8x8xbf16>, vector<8x8xbf16>, vector<8x8xf32> -> vector<8x8xf32>
    %123 = arith.truncf %122 : vector<8x8xf32> to vector<8x8xbf16>
    %c0_40 = arith.constant 0 : index
    %c0_41 = arith.constant 0 : index
    %124 = vector.load %arg3[%c0_40, %c0_41] : memref<32x32xbf16, #tpu.memory_space<vmem>>, vector<8x32xbf16>
    %cst_42 = arith.constant dense<0.000000e+00> : vector<8x32xf32>
    %125 = tpu.matmul %123, %124, %cst_42 {dimension_numbers = #tpu.dot_dimension_numbers<[1], [0], [0], [1], [0, 0, 1, 1], [], []>} : vector<8x8xbf16>, vector<8x32xbf16>, vector<8x32xf32> -> vector<8x32xf32>
    %126 = arith.addf %103, %125 : vector<8x32xf32>
    %127 = vector.extract_strided_slice %5 {offsets = [8, 8], sizes = [8, 8], strides = [1, 1]} : vector<16x96xf32> to vector<8x8xf32>
    %128 = vector.extract_strided_slice %5 {offsets = [8, 40], sizes = [8, 8], strides = [1, 1]} : vector<16x96xf32> to vector<8x8xf32>
    %129 = vector.extract_strided_slice %5 {offsets = [8, 72], sizes = [8, 8], strides = [1, 1]} : vector<16x96xf32> to vector<8x8xf32>
    %130 = arith.truncf %127 : vector<8x8xf32> to vector<8x8xbf16>
    %131 = arith.truncf %128 : vector<8x8xf32> to vector<8x8xbf16>
    %cst_43 = arith.constant dense<0.000000e+00> : vector<8x8xf32>
    %132 = tpu.matmul %130, %131, %cst_43 {dimension_numbers = #tpu.dot_dimension_numbers<[1], [1], [0], [0], [0, 0, 1, 0], [], []>} : vector<8x8xbf16>, vector<8x8xbf16>, vector<8x8xf32> -> vector<8x8xf32>
    %cst_44 = arith.constant dense<0xFF800000> : vector<8xf32>
    %133 = vector.multi_reduction <maximumf>, %132, %cst_44 [1] : vector<8x8xf32> to vector<8xf32>
    %134 = vector.shape_cast %133 : vector<8xf32> to vector<8x1xf32>
    %135 = vector.broadcast %134 : vector<8x1xf32> to vector<8x8xf32>
    %136 = arith.subf %132, %135 : vector<8x8xf32>
    %137 = math.exp %136 : vector<8x8xf32>
    %cst_45 = arith.constant dense<0.000000e+00> : vector<8xf32>
    %138 = vector.multi_reduction <add>, %137, %cst_45 [1] : vector<8x8xf32> to vector<8xf32>
    %139 = vector.shape_cast %138 : vector<8xf32> to vector<8x1xf32>
    %140 = tpu.reciprocal %139 {approx = true} : vector<8x1xf32> -> vector<8x1xf32>
    %141 = vector.broadcast %140 : vector<8x1xf32> to vector<8x8xf32>
    %142 = arith.mulf %137, %141 : vector<8x8xf32>
    %143 = arith.truncf %142 : vector<8x8xf32> to vector<8x8xbf16>
    %144 = arith.truncf %129 : vector<8x8xf32> to vector<8x8xbf16>
    %cst_46 = arith.constant dense<0.000000e+00> : vector<8x8xf32>
    %145 = tpu.matmul %143, %144, %cst_46 {dimension_numbers = #tpu.dot_dimension_numbers<[1], [0], [0], [1], [0, 0, 1, 1], [], []>} : vector<8x8xbf16>, vector<8x8xbf16>, vector<8x8xf32> -> vector<8x8xf32>
    %146 = arith.truncf %145 : vector<8x8xf32> to vector<8x8xbf16>
    %c8_47 = arith.constant 8 : index
    %c0_48 = arith.constant 0 : index
    %147 = vector.load %arg3[%c8_47, %c0_48] : memref<32x32xbf16, #tpu.memory_space<vmem>>, vector<8x32xbf16>
    %cst_49 = arith.constant dense<0.000000e+00> : vector<8x32xf32>
    %148 = tpu.matmul %146, %147, %cst_49 {dimension_numbers = #tpu.dot_dimension_numbers<[1], [0], [0], [1], [0, 0, 1, 1], [], []>} : vector<8x8xbf16>, vector<8x32xbf16>, vector<8x32xf32> -> vector<8x32xf32>
    %149 = arith.addf %126, %148 : vector<8x32xf32>
    %150 = vector.extract_strided_slice %5 {offsets = [8, 16], sizes = [8, 8], strides = [1, 1]} : vector<16x96xf32> to vector<8x8xf32>
    %151 = vector.extract_strided_slice %5 {offsets = [8, 48], sizes = [8, 8], strides = [1, 1]} : vector<16x96xf32> to vector<8x8xf32>
    %152 = vector.extract_strided_slice %5 {offsets = [8, 80], sizes = [8, 8], strides = [1, 1]} : vector<16x96xf32> to vector<8x8xf32>
    %153 = arith.truncf %150 : vector<8x8xf32> to vector<8x8xbf16>
    %154 = arith.truncf %151 : vector<8x8xf32> to vector<8x8xbf16>
    %cst_50 = arith.constant dense<0.000000e+00> : vector<8x8xf32>
    %155 = tpu.matmul %153, %154, %cst_50 {dimension_numbers = #tpu.dot_dimension_numbers<[1], [1], [0], [0], [0, 0, 1, 0], [], []>} : vector<8x8xbf16>, vector<8x8xbf16>, vector<8x8xf32> -> vector<8x8xf32>
    %cst_51 = arith.constant dense<0xFF800000> : vector<8xf32>
    %156 = vector.multi_reduction <maximumf>, %155, %cst_51 [1] : vector<8x8xf32> to vector<8xf32>
    %157 = vector.shape_cast %156 : vector<8xf32> to vector<8x1xf32>
    %158 = vector.broadcast %157 : vector<8x1xf32> to vector<8x8xf32>
    %159 = arith.subf %155, %158 : vector<8x8xf32>
    %160 = math.exp %159 : vector<8x8xf32>
    %cst_52 = arith.constant dense<0.000000e+00> : vector<8xf32>
    %161 = vector.multi_reduction <add>, %160, %cst_52 [1] : vector<8x8xf32> to vector<8xf32>
    %162 = vector.shape_cast %161 : vector<8xf32> to vector<8x1xf32>
    %163 = tpu.reciprocal %162 {approx = true} : vector<8x1xf32> -> vector<8x1xf32>
    %164 = vector.broadcast %163 : vector<8x1xf32> to vector<8x8xf32>
    %165 = arith.mulf %160, %164 : vector<8x8xf32>
    %166 = arith.truncf %165 : vector<8x8xf32> to vector<8x8xbf16>
    %167 = arith.truncf %152 : vector<8x8xf32> to vector<8x8xbf16>
    %cst_53 = arith.constant dense<0.000000e+00> : vector<8x8xf32>
    %168 = tpu.matmul %166, %167, %cst_53 {dimension_numbers = #tpu.dot_dimension_numbers<[1], [0], [0], [1], [0, 0, 1, 1], [], []>} : vector<8x8xbf16>, vector<8x8xbf16>, vector<8x8xf32> -> vector<8x8xf32>
    %169 = arith.truncf %168 : vector<8x8xf32> to vector<8x8xbf16>
    %c16_54 = arith.constant 16 : index
    %c0_55 = arith.constant 0 : index
    %170 = vector.load %arg3[%c16_54, %c0_55] : memref<32x32xbf16, #tpu.memory_space<vmem>>, vector<8x32xbf16>
    %cst_56 = arith.constant dense<0.000000e+00> : vector<8x32xf32>
    %171 = tpu.matmul %169, %170, %cst_56 {dimension_numbers = #tpu.dot_dimension_numbers<[1], [0], [0], [1], [0, 0, 1, 1], [], []>} : vector<8x8xbf16>, vector<8x32xbf16>, vector<8x32xf32> -> vector<8x32xf32>
    %172 = arith.addf %149, %171 : vector<8x32xf32>
    %173 = vector.extract_strided_slice %5 {offsets = [8, 24], sizes = [8, 8], strides = [1, 1]} : vector<16x96xf32> to vector<8x8xf32>
    %174 = vector.extract_strided_slice %5 {offsets = [8, 56], sizes = [8, 8], strides = [1, 1]} : vector<16x96xf32> to vector<8x8xf32>
    %175 = vector.extract_strided_slice %5 {offsets = [8, 88], sizes = [8, 8], strides = [1, 1]} : vector<16x96xf32> to vector<8x8xf32>
    %176 = arith.truncf %173 : vector<8x8xf32> to vector<8x8xbf16>
    %177 = arith.truncf %174 : vector<8x8xf32> to vector<8x8xbf16>
    %cst_57 = arith.constant dense<0.000000e+00> : vector<8x8xf32>
    %178 = tpu.matmul %176, %177, %cst_57 {dimension_numbers = #tpu.dot_dimension_numbers<[1], [1], [0], [0], [0, 0, 1, 0], [], []>} : vector<8x8xbf16>, vector<8x8xbf16>, vector<8x8xf32> -> vector<8x8xf32>
    %cst_58 = arith.constant dense<0xFF800000> : vector<8xf32>
    %179 = vector.multi_reduction <maximumf>, %178, %cst_58 [1] : vector<8x8xf32> to vector<8xf32>
    %180 = vector.shape_cast %179 : vector<8xf32> to vector<8x1xf32>
    %181 = vector.broadcast %180 : vector<8x1xf32> to vector<8x8xf32>
    %182 = arith.subf %178, %181 : vector<8x8xf32>
    %183 = math.exp %182 : vector<8x8xf32>
    %cst_59 = arith.constant dense<0.000000e+00> : vector<8xf32>
    %184 = vector.multi_reduction <add>, %183, %cst_59 [1] : vector<8x8xf32> to vector<8xf32>
    %185 = vector.shape_cast %184 : vector<8xf32> to vector<8x1xf32>
    %186 = tpu.reciprocal %185 {approx = true} : vector<8x1xf32> -> vector<8x1xf32>
    %187 = vector.broadcast %186 : vector<8x1xf32> to vector<8x8xf32>
    %188 = arith.mulf %183, %187 : vector<8x8xf32>
    %189 = arith.truncf %188 : vector<8x8xf32> to vector<8x8xbf16>
    %190 = arith.truncf %175 : vector<8x8xf32> to vector<8x8xbf16>
    %cst_60 = arith.constant dense<0.000000e+00> : vector<8x8xf32>
    %191 = tpu.matmul %189, %190, %cst_60 {dimension_numbers = #tpu.dot_dimension_numbers<[1], [0], [0], [1], [0, 0, 1, 1], [], []>} : vector<8x8xbf16>, vector<8x8xbf16>, vector<8x8xf32> -> vector<8x8xf32>
    %192 = arith.truncf %191 : vector<8x8xf32> to vector<8x8xbf16>
    %c24_61 = arith.constant 24 : index
    %c0_62 = arith.constant 0 : index
    %193 = vector.load %arg3[%c24_61, %c0_62] : memref<32x32xbf16, #tpu.memory_space<vmem>>, vector<8x32xbf16>
    %cst_63 = arith.constant dense<0.000000e+00> : vector<8x32xf32>
    %194 = tpu.matmul %192, %193, %cst_63 {dimension_numbers = #tpu.dot_dimension_numbers<[1], [0], [0], [1], [0, 0, 1, 1], [], []>} : vector<8x8xbf16>, vector<8x32xbf16>, vector<8x32xf32> -> vector<8x32xf32>
    %195 = arith.addf %172, %194 : vector<8x32xf32>
    %c0_64 = arith.constant 0 : index
    %c0_65 = arith.constant 0 : index
    %196 = vector.load %arg4[%c0_64, %c0_65] : memref<1x32xf32, #tpu.memory_space<vmem>>, vector<1x32xf32>
    %197 = vector.broadcast %196 : vector<1x32xf32> to vector<8x32xf32>
    %198 = arith.addf %195, %197 : vector<8x32xf32>
    %c8_66 = arith.constant 8 : index
    %c0_67 = arith.constant 0 : index
    %199 = vector.load %arg5[%c8_66, %c0_67] : memref<16x32xf32, #tpu.memory_space<vmem>>, vector<8x32xf32>
    tpu.vector_store %arg5[%c8_66, %c0_67], %198 {strides = array<i32>} : memref<16x32xf32, #tpu.memory_space<vmem>>, vector<8x32xf32>,
    return
  }
}

</mosaic_0001>

<bundles_post_ra>
// kernel: tpu_custom_call.1
= control target key start
LH: loop header
LB: loop body
LE: loop exit
PB: predicated region body
PF: predicated region fallthrough
CT: control target
= control target key end

     0   :  { %10 = vsyncpa [#allocation3], 0  ;;  %s1165_s0 = inlined_call_operand.hbm [shape: bf16[16,32], index: 0, kind: input, shape index: {}]   ;;  %s1166_s1 = inlined_call_operand.hbm [shape: bf16[32,96], index: 1, kind: input, shape index: {}]   ;;  %s1167_s2 = inlined_call_operand.vmem [shape: f32[1,96], index: 2, kind: input, shape index: {}]   ;;  %s1168_s3 = inlined_call_operand.hbm [shape: bf16[32,32], index: 3, kind: input, shape index: {}]   ;;  %s1169_s4 = inlined_call_operand.vmem [shape: f32[1,32], index: 4, kind: input, shape index: {}]   ;;  %s1170_s5 = inlined_call_operand.hbm [shape: f32[16,32], index: 5, kind: output, shape index: {}]  }
   0x1   :  { %11 = vsyncpa [#allocation6], 0 }
   0x2   :  { %12 = vsyncpa [#allocation4], 0  ;;  %s30_s20 = sshll.u32 %s1166_s1, 4  ;;  %s963_s21 = smov [#allocation5]   ;;  %s31_s20 = int_to_ptr.hbm [resolvable:$true] %s30_s20 }
   0x3   :  { %s32_s22 = sshll.u32 %s963_s21, 4  ;;  %s17_s25 = sshll.u32 %s1165_s0, 4  ;;  %s33_s22 = int_to_ptr.vmem [resolvable:$true] %s32_s22  ;;  %s18_s25 = int_to_ptr.hbm [resolvable:$true] %s17_s25 }
   0x4   :  { %s964_s26 = smov 64   ;;  %s965_s27 = smov 4  }
   0x5   :  { %38 = dma.hbm_to_vmem [thread:$0]  %s31_s20, 256, %s33_s22, [#allocation6], %s964_s26, %s964_s26, %s965_s27  }
   0x6   :  { %s966_s28 = smov [#allocation2]   ;;  %s45_s1 = sshll.u32 %s1168_s3, 4  ;;  %s46_s1 = int_to_ptr.hbm [resolvable:$true] %s45_s1 }
   0x7   :  { %s19_s29 = sshll.u32 %s966_s28, 4  ;;  %s967_s7 = smov [#allocation7]   ;;  %s20_s29 = int_to_ptr.vmem [resolvable:$true] %s19_s29 }
   0x8   :  { %25 = dma.hbm_to_vmem [thread:$0]  %s18_s25, 128, %s20_s29, [#allocation3], %s964_s26, %s964_s26, %s965_s27  }
   0x9   :  { %s47_s8 = sshll.u32 %s967_s7, 4  ;;  %s48_s8 = int_to_ptr.vmem [resolvable:$true] %s47_s8 }
   0xa   :  { %53 = dma.hbm_to_vmem [thread:$0]  %s46_s1, 256, %s48_s8, [#allocation6], %s964_s26, %s964_s26, %s965_s27  }
   0xb   :  { %957 = dma.done.wait [#allocation3], 128  }
   0xc   :  { %958 = vsyncadd [#allocation3], 4294967168 }
   0xd   :  { %959 = dma.done.wait [#allocation6], 512  }
   0xe   :  { %960 = vsyncadd [#allocation6], 4294966784  ;;  %v807_v0 = vld [vmem:[#allocation5 + $0x8] sm:$0xff]  ;;  %v806_v1 = vld [vmem:[#allocation5] sm:$0xff]  ;;  %vm96_vm0 = vcmask 261120   ;;  %s968_s9 = smov 112  }
   0xf   :  { %106 = vmatpush.bf16.msra.mxu0 %v807_v0  ;;  %v805_v2 = vld [vmem:[#allocation2] sm:$0xff]  ;;  %s969_s10 = smov 120   ;;  %s970_s11 = smov 96   ;;  %vm118_vm1 = vcmask 64512   ;;  %vm155_vm2 = vcmask 1043456  }
  0x10   :  { %v1030_v3 = vld [vmem:[%s1167_s2] ss:$0 sm:$0xff]  ;;  %s971_s12 = smov 80   ;;  %s972_s2 = smov 88   ;;  %v173_v34 = vld [vmem:[#allocation7] sm:$0xf] }
  0x11   :  { %s973_s13 = smov 56   ;;  %s974_s14 = smov 72   ;;  %v255_v36 = vsel %vm155_vm2, %v173_v34, 0  ;;  %v231_v0 = vld [vmem:[#allocation7 + $0x4] sm:$0xf] }
  0x12   :  { %s975_s15 = smov 104   ;;  %s976_s16 = smov 48  }
  0x13   :  { %107 = vmatpush.bf16.msra.mxu0 %v806_v1  ;;  %v236_v1 = vsel %vm155_vm2, %v231_v0, 0  ;;  %s977_s17 = smov 40   ;;  %s978_s22 = smov [#allocation8]  }
  0x14   :  { %s752_s23 = sshll.u32 %s978_s22, 4  ;;  %s979_s27 = smov 128   ;;  %s753_s23 = int_to_ptr.vmem [resolvable:$true] %s752_s23 }
  0x15   :  { %s980_s28 = smov 8  }
  0x16   :  { %780 = vmatmul.msk.bf16.vlgmr.msra.gmra.mxu0 %vm96_vm0, %v805_v2 }
  0x17   :  { %245 = vmatpush.bf16.msrb.mxu0 %v236_v1 }
  0x93   :  { %v109_v4 = vpop.f32.mrf.mxu0 }
  0x94   :  { %v110_v5 = vadd.f32 %v1030_v3, %v109_v4 }
  0x96   :  { %v1033_v6 = vpack.c.bf16 %v110_v5, %v110_v5 }
  0x98   :  { %270 = vrot.lane.b32.xlu2 %v1033_v6, %s968_s9  ;;  %174 = vrot.lane.b32.xlu1 %v1033_v6, %s969_s10 }
  0x99   :  { %116 = vrot.lane.b32.xlu0 %v1033_v6, %s970_s11 }
  0x9b   :  { %v111_v39 = vpop.f32.mrf.mxu0 }
  0x9c   :  { %v112_v40 = vadd.f32 %v1030_v3, %v111_v39  ;;  %v327_v3 = vld [vmem:[#allocation7 + $0x8] sm:$0xf] }
  0x9d   :  { %v332_v4 = vsel %vm155_vm2, %v327_v3, 0 }
  0x9e   :  { %v1066_v43 = vpack.c.bf16 %v112_v40, %v112_v40  ;;  %341 = vmatpush.bf16.msra.mxu0 %v332_v4 }
  0xa0   :  { %272 = vrot.lane.b32.xlu1 %v1033_v6, %s971_s12 }
  0xa1   :  { %176 = vrot.lane.b32.xlu0 %v1033_v6, %s972_s2 }
  0xf2   :  { %v271_v14 = vpop.permute.xlu2 %270 }
 0x10a   :  { %v175_v7 = vpop.permute.xlu1 %174 }
 0x10b   :  { %v117_v8 = vpop.permute.xlu0 %116 }
 0x10c   :  { %v123_v9 = vsel %vm118_vm1, %v117_v8, 0 }
 0x10d   :  { %132 = vmatpush.bf16.xpose.msra.mxu1 %v123_v9 }
 0x112   :  { %v273_v10 = vpop.permute.xlu1 %272 }
 0x113   :  { %v177_v11 = vpop.permute.xlu0 %176  ;;  %v278_v12 = vsel %vm118_vm1, %v273_v10, 0 }
 0x114   :  { %781 = vmatmul.msk.bf16.vlgmr.msra.gmra.mxu1 %vm118_vm1, %v1033_v6  ;;  %v182_v13 = vsel %vm118_vm1, %v177_v11, 0 }
 0x115   :  { %191 = vmatpush.bf16.xpose.msra.mxu3 %v182_v13  ;;  %264 = vmatpush.bf16.msrb.mxu1 %v255_v36 }
 0x11c   :  { %783 = vmatmul.msk.bf16.vlgmr.msra.gmra.mxu3 %vm118_vm1, %v175_v7 }
 0x11d   :  { %287 = vmatpush.bf16.xpose.msrb.mxu3 %v278_v12 }
 0x12c   :  { %787 = vmatmul.msk.bf16.vlgmr.msrb.gmra.mxu3 %vm118_vm1, %v271_v14 }
 0x191   :  { %v134_v15 = vpop.f32.mrf.mxu1 }
 0x192   :  { %v138_v16 = vsel %vm118_vm1, %v134_v15, -inf }
 0x193   :  { %139 = vmax.xlane.f32.xlu2 %v138_v16 }
 0x199   :  { %v136_v17 = vpop.f32.mrf.mxu1 }
 0x19f   :  { %v193_v18 = vpop.f32.mrf.mxu3 }
 0x1a0   :  { %v197_v19 = vsel %vm118_vm1, %v193_v18, -inf }
 0x1a1   :  { %198 = vmax.xlane.f32.xlu0 %v197_v19 }
 0x1a7   :  { %v195_v20 = vpop.f32.mrf.mxu3 }
 0x1af   :  { %v289_v21 = vpop.f32.mrf.mxu3 }
 0x1b0   :  { %v293_v22 = vsel %vm118_vm1, %v289_v21, -inf }
 0x1b1   :  { %294 = vmax.xlane.f32.xlu1 %v293_v22 }
 0x1b7   :  { %v291_v23 = vpop.f32.mrf.mxu3 }
 0x1ca   :  { %209 = vrot.lane.b32.xlu1 %v1033_v6, %s973_s13 }
 0x1d2   :  { %350 = vrot.lane.b32.xlu1 %v1033_v6, %s974_s14 }
 0x206   :  { %v140_v24 = vpop.xlane.xlu2 %139 }
 0x207   :  { %v141_v25 = vsub.f32 %v134_v15, %v140_v24 }
 0x209   :  { %v142_v26 = vmul.f32 1.442695, %v141_v25 }
 0x20b   :  { %829 = vpow2.f32 %v142_v26 }
 0x211   :  { %v830_v27 = vpop.eup %829 }
 0x212   :  { %v144_v28 = vsel %vm118_vm1, %v830_v27, 0.0 }
 0x213   :  { %145 = vadd.xlane.f32.xlu2 %v144_v28 }
 0x214   :  { %v199_v29 = vpop.xlane.xlu0 %198 }
 0x215   :  { %v200_v30 = vsub.f32 %v193_v18, %v199_v29 }
 0x217   :  { %v201_v31 = vmul.f32 1.442695, %v200_v30 }
 0x219   :  { %831 = vpow2.f32 %v201_v31 }
 0x21f   :  { %v832_v32 = vpop.eup %831 }
 0x220   :  { %v203_v33 = vsel %vm118_vm1, %v832_v32, 0.0 }
 0x221   :  { %204 = vadd.xlane.f32.xlu0 %v203_v33 }
 0x224   :  { %v295_v35 = vpop.xlane.xlu1 %294 }
 0x225   :  { %v296_v37 = vsub.f32 %v289_v21, %v295_v35 }
 0x227   :  { %v297_v38 = vmul.f32 1.442695, %v296_v37 }
 0x229   :  { %833 = vpow2.f32 %v297_v38 }
 0x22b   :  { %150 = vrot.lane.b32.xlu2 %v1033_v6, %s964_s26 }
 0x22f   :  { %v834_v41 = vpop.eup %833 }
 0x230   :  { %v299_v42 = vsel %vm118_vm1, %v834_v41, 0.0 }
 0x231   :  { %300 = vadd.xlane.f32.xlu0 %v299_v42 }
 0x233   :  { %434 = vrot.lane.b32.xlu2 %v1066_v43, %s970_s11 }
 0x23b   :  { %348 = vrot.lane.b32.xlu2 %v1033_v6, %s975_s15 }
 0x23c   :  { %v210_v44 = vpop.permute.xlu1 %209 }
 0x23d   :  { %v215_v52 = vsel %vm155_vm2, %v210_v44, 0 }
 0x243   :  { %467 = vrot.lane.b32.xlu2 %v1066_v43, %s964_s26  ;;  %s754_s26 = sshll.u32 %s1170_s5, 4  ;;  %s755_s26 = int_to_ptr.hbm [resolvable:$true] %s754_s26 }
 0x244   :  { %v351_v45 = vpop.permute.xlu1 %350 }
 0x245   :  { %v356_v46 = vsel %vm118_vm1, %v351_v45, 0  ;;  %305 = vrot.lane.b32.xlu0 %v1033_v6, %s976_s16  ;;  %v489_v45 = vld [vmem:[#allocation7] sm:$0xf] }
 0x246   :  { %365 = vmatpush.bf16.xpose.msra.mxu1 %v356_v46  ;;  %v571_v46 = vsel %vm155_vm2, %v489_v45, 0 }
 0x286   :  { %v146_v47 = vpop.xlane.xlu2 %145 }
 0x287   :  { %835 = vrcp.f32 %v146_v47 }
 0x28d   :  { %v836_v48 = vpop.eup %835 }
 0x28e   :  { %v151_v49 = vpop.permute.xlu2 %150  ;;  %v148_v50 = vmul.f32 %v836_v48, %v830_v27 }
 0x28f   :  { %v157_v51 = vsel %vm155_vm2, %v151_v49, 0 }
 0x290   :  { %166 = vmatpush.bf16.msra.mxu2 %v157_v51  ;;  %v149_v53 = vpack.c.bf16 %v148_v50, %v148_v50 }
 0x293   :  { %782 = vmatmul.msk.bf16.vlgmr.msra.gmra.mxu2 %vm118_vm1, %v149_v53 }
 0x294   :  { %224 = vmatpush.bf16.msrb.mxu2 %v215_v52  ;;  %v205_v54 = vpop.xlane.xlu0 %204 }
 0x295   :  { %837 = vrcp.f32 %v205_v54 }
 0x296   :  { %v435_v2 = vpop.permute.xlu2 %434 }
 0x297   :  { %v440_v14 = vsel %vm118_vm1, %v435_v2, 0 }
 0x29b   :  { %v838_v55 = vpop.eup %837 }
 0x29c   :  { %v207_v56 = vmul.f32 %v838_v55, %v832_v32 }
 0x29e   :  { %v208_v57 = vpack.c.bf16 %v207_v56, %v207_v56  ;;  %v349_v5 = vpop.permute.xlu2 %348 }
 0x2a3   :  { %784 = vmatmul.msk.bf16.vlgmr.msrb.gmra.mxu2 %vm118_vm1, %v208_v57 }
 0x2a4   :  { %v301_v58 = vpop.xlane.xlu0 %300 }
 0x2a5   :  { %839 = vrcp.f32 %v301_v58 }
 0x2a6   :  { %v468_v7 = vpop.permute.xlu2 %467 }
 0x2a7   :  { %v473_v10 = vsel %vm155_vm2, %v468_v7, 0 }
 0x2ab   :  { %v840_v59 = vpop.eup %839 }
 0x2ac   :  { %v303_v60 = vmul.f32 %v840_v59, %v834_v41 }
 0x2ae   :  { %v304_v63 = vpack.c.bf16 %v303_v60, %v303_v60 }
 0x2b7   :  { %v306_v61 = vpop.permute.xlu0 %305 }
 0x2b8   :  { %v311_v62 = vsel %vm155_vm2, %v306_v61, 0 }
 0x2b9   :  { %320 = vmatpush.bf16.msra.mxu2 %v311_v62 }
 0x2bc   :  { %788 = vmatmul.msk.bf16.vlgmr.msra.gmra.mxu2 %vm118_vm1, %v304_v63  ;;  %v405_v63 = vld [vmem:[#allocation7 + $0xc] sm:$0xf] }
 0x2bd   :  { %v410_v0 = vsel %vm155_vm2, %v405_v63, 0 }
 0x2be   :  { %419 = vmatpush.bf16.msrb.mxu2 %v410_v0 }
 0x316   :  { %v168_v8 = vpop.f32.mrf.mxu2 }
 0x317   :  { %v172_v9 = vpack.c.bf16 %v168_v8, %v168_v8 }
 0x319   :  { %786 = vmatmul.msk.bf16.vlgmr.msrb.gmra.mxu1 %vm118_vm1, %v172_v9 }
 0x31a   :  { %482 = vmatpush.bf16.msrb.mxu1 %v473_v10 }
 0x31e   :  { %v170_v11 = vpop.f32.mrf.mxu2 }
 0x326   :  { %v226_v12 = vpop.f32.mrf.mxu2 }
 0x327   :  { %v230_v13 = vpack.c.bf16 %v226_v12, %v226_v12 }
 0x329   :  { %785 = vmatmul.msk.bf16.vlgmr.msrb.gmra.mxu0 %vm118_vm1, %v230_v13  ;;  %790 = vmatmul.msk.bf16.vlgmr.msra.gmra.mxu1 %vm118_vm1, %v349_v5 }
 0x32a   :  { %449 = vmatpush.bf16.xpose.msrb.mxu0 %v440_v14  ;;  %580 = vmatpush.bf16.msra.mxu1 %v571_v46 }
 0x32e   :  { %v228_v15 = vpop.f32.mrf.mxu2 }
 0x33f   :  { %v322_v16 = vpop.f32.mrf.mxu2 }
 0x340   :  { %v326_v17 = vpack.c.bf16 %v322_v16, %v322_v16 }
 0x342   :  { %789 = vmatmul.msk.bf16.vlgmr.msra.gmra.mxu0 %vm118_vm1, %v326_v17 }
 0x347   :  { %v324_v18 = vpop.f32.mrf.mxu2 }
 0x352   :  { %793 = vmatmul.msk.bf16.vlgmr.msrb.gmra.mxu0 %vm118_vm1, %v1066_v43 }
 0x396   :  { %v266_v19 = vpop.f32.mrf.mxu1 }
 0x39e   :  { %v268_v20 = vpop.f32.mrf.mxu1 }
 0x39f   :  { %v827_v20 = vld [vmem:[%s1169_s4] ss:$0 sm:$0xff] }
 0x3a6   :  { %v247_v21 = vpop.f32.mrf.mxu0  ;;  %v367_v22 = vpop.f32.mrf.mxu1 }
 0x3a7   :  { %v267_v23 = vadd.f32 %v266_v19, %v247_v21  ;;  %v371_v24 = vsel %vm118_vm1, %v367_v22, -inf }
 0x3a8   :  { %372 = vmax.xlane.f32.xlu2 %v371_v24 }
 0x3ae   :  { %v249_v25 = vpop.f32.mrf.mxu0  ;;  %v369_v26 = vpop.f32.mrf.mxu1 }
 0x3bf   :  { %v343_v27 = vpop.f32.mrf.mxu0 }
 0x3c0   :  { %v1094_v28 = vadd.f32 %v343_v27, %v267_v23  ;;  %490 = vrot.lane.b32.xlu2 %v1066_v43, %s969_s10 }
 0x3c7   :  { %v345_v29 = vpop.f32.mrf.mxu0 }
 0x3c8   :  { %664 = vrot.lane.b32.xlu2 %v1066_v43, %s975_s15 }
 0x3cf   :  { %v451_v30 = vpop.f32.mrf.mxu0 }
 0x3d0   :  { %v455_v31 = vsel %vm118_vm1, %v451_v30, -inf }
 0x3d1   :  { %456 = vmax.xlane.f32.xlu1 %v455_v31 }
 0x3d7   :  { %v453_v32 = vpop.f32.mrf.mxu0 }
 0x41b   :  { %v373_v33 = vpop.xlane.xlu2 %372 }
 0x41c   :  { %v374_v34 = vsub.f32 %v367_v22, %v373_v33 }
 0x41e   :  { %v375_v35 = vmul.f32 1.442695, %v374_v34 }
 0x420   :  { %841 = vpow2.f32 %v375_v35 }
 0x423   :  { %v491_v61 = vpop.permute.xlu2 %490 }
 0x426   :  { %v842_v36 = vpop.eup %841 }
 0x427   :  { %v377_v37 = vsel %vm118_vm1, %v842_v36, 0.0 }
 0x428   :  { %378 = vadd.xlane.f32.xlu1 %v377_v37 }
 0x42b   :  { %v665_v4 = vpop.permute.xlu2 %664 }
 0x441   :  { %492 = vrot.lane.b32.xlu1 %v1066_v43, %s972_s2 }
 0x444   :  { %v457_v38 = vpop.xlane.xlu1 %456 }
 0x445   :  { %v458_v39 = vsub.f32 %v451_v30, %v457_v38 }
 0x447   :  { %v459_v40 = vmul.f32 1.442695, %v458_v39 }
 0x449   :  { %843 = vpow2.f32 %v459_v40  ;;  %586 = vrot.lane.b32.xlu1 %v1066_v43, %s968_s9 }
 0x44f   :  { %v844_v41 = vpop.eup %843 }
 0x450   :  { %v461_v42 = vsel %vm118_vm1, %v844_v41, 0.0 }
 0x451   :  { %462 = vadd.xlane.f32.xlu0 %v461_v42 }
 0x465   :  { %383 = vrot.lane.b32.xlu0 %v1033_v6, %s977_s17 }
 0x46d   :  { %588 = vrot.lane.b32.xlu0 %v1066_v43, %s971_s12 }
 0x475   :  { %666 = vrot.lane.b32.xlu0 %v1066_v43, %s974_s14 }
 0x49b   :  { %v379_v47 = vpop.xlane.xlu1 %378 }
 0x4b3   :  { %v493_v52 = vpop.permute.xlu1 %492 }
 0x4b4   :  { %v498_v55 = vsel %vm118_vm1, %v493_v52, 0 }
 0x4bb   :  { %v587_v62 = vpop.permute.xlu1 %586 }
 0x4c4   :  { %v463_v44 = vpop.xlane.xlu0 %462 }
 0x4c5   :  { %845 = vrcp.f32 %v463_v44 }
 0x4c6   :  { %847 = vrcp.f32 %v379_v47 }
 0x4cb   :  { %v846_v48 = vpop.eup %845 }
 0x4cc   :  { %v465_v49 = vmul.f32 %v846_v48, %v844_v41  ;;  %v848_v6 = vpop.eup %847 }
 0x4cd   :  { %v381_v51 = vmul.f32 %v848_v6, %v842_v36 }
 0x4ce   :  { %v466_v50 = vpack.c.bf16 %v465_v49, %v465_v49 }
 0x4cf   :  { %v382_v56 = vpack.c.bf16 %v381_v51, %v381_v51 }
 0x4d0   :  { %794 = vmatmul.msk.bf16.vlgmr.msrb.gmra.mxu1 %vm118_vm1, %v466_v50 }
 0x4d7   :  { %v384_v53 = vpop.permute.xlu0 %383 }
 0x4d8   :  { %v389_v54 = vsel %vm155_vm2, %v384_v53, 0  ;;  %v547_v53 = vld [vmem:[#allocation7 + $0x4] sm:$0xf] }
 0x4d9   :  { %398 = vmatpush.bf16.msra.mxu3 %v389_v54  ;;  %v552_v54 = vsel %vm155_vm2, %v547_v53, 0 }
 0x4da   :  { %561 = vmatpush.bf16.msra.mxu0 %v552_v54 }
 0x4dc   :  { %791 = vmatmul.msk.bf16.vlgmr.msra.gmra.mxu3 %vm118_vm1, %v382_v56 }
 0x4dd   :  { %507 = vmatpush.bf16.xpose.msrb.mxu3 %v498_v55 }
 0x4df   :  { %v589_v57 = vpop.permute.xlu0 %588 }
 0x4e0   :  { %v594_v58 = vsel %vm118_vm1, %v589_v57, 0 }
 0x4e5   :  { %603 = vmatpush.bf16.xpose.msra.mxu3 %v594_v58 }
 0x4e7   :  { %v667_v59 = vpop.permute.xlu0 %666 }
 0x4e8   :  { %v672_v60 = vsel %vm118_vm1, %v667_v59, 0  ;;  %v643_v59 = vld [vmem:[#allocation7 + $0x8] sm:$0xf] }
 0x4e9   :  { %681 = vmatpush.bf16.xpose.msrb.mxu1 %v672_v60  ;;  %v648_v60 = vsel %vm155_vm2, %v643_v59, 0 }
 0x4ea   :  { %657 = vmatpush.bf16.msrb.mxu0 %v648_v60 }
 0x4ec   :  { %795 = vmatmul.msk.bf16.vlgmr.msrb.gmra.mxu3 %vm118_vm1, %v491_v61 }
 0x4fc   :  { %799 = vmatmul.msk.bf16.vlgmr.msra.gmra.mxu3 %vm118_vm1, %v587_v62 }
 0x54d   :  { %v484_v1 = vpop.f32.mrf.mxu1 }
 0x54e   :  { %v488_v2 = vpack.c.bf16 %v484_v1, %v484_v1 }
 0x550   :  { %798 = vmatmul.msk.bf16.vlgmr.msra.gmra.mxu1 %vm118_vm1, %v488_v2 }
 0x555   :  { %v486_v3 = vpop.f32.mrf.mxu1 }
 0x556   :  { %v721_v3 = vld [vmem:[#allocation7 + $0xc] sm:$0xf] }
 0x55f   :  { %v400_v5 = vpop.f32.mrf.mxu3 }
 0x560   :  { %v404_v7 = vpack.c.bf16 %v400_v5, %v400_v5  ;;  %802 = vmatmul.msk.bf16.vlgmr.msrb.gmra.mxu1 %vm118_vm1, %v665_v4  ;;  %v726_v4 = vsel %vm155_vm2, %v721_v3, 0 }
 0x562   :  { %792 = vmatmul.msk.bf16.vlgmr.msrb.gmra.mxu2 %vm118_vm1, %v404_v7 }
 0x567   :  { %v402_v8 = vpop.f32.mrf.mxu3 }
 0x56f   :  { %v509_v9 = vpop.f32.mrf.mxu3 }
 0x570   :  { %v513_v10 = vsel %vm118_vm1, %v509_v9, -inf }
 0x571   :  { %514 = vmax.xlane.f32.xlu0 %v513_v10 }
 0x577   :  { %v511_v11 = vpop.f32.mrf.mxu3 }
 0x57f   :  { %v605_v12 = vpop.f32.mrf.mxu3 }
 0x580   :  { %v609_v13 = vsel %vm118_vm1, %v605_v12, -inf }
 0x581   :  { %610 = vmax.xlane.f32.xlu2 %v609_v13 }
 0x587   :  { %v607_v14 = vpop.f32.mrf.mxu3 }
 0x5cd   :  { %v1128_v15 = vpop.f32.mrf.mxu1 }
 0x5d5   :  { %v584_v16 = vpop.f32.mrf.mxu1 }
 0x5d6   :  { %v828_v16 = vld [vmem:[%s1169_s4] ss:$0 sm:$0xff] }
 0x5dd   :  { %v683_v17 = vpop.f32.mrf.mxu1 }
 0x5de   :  { %v687_v18 = vsel %vm118_vm1, %v683_v17, -inf }
 0x5df   :  { %688 = vmax.xlane.f32.xlu1 %v687_v18 }
 0x5e4   :  { %v515_v19 = vpop.xlane.xlu0 %514 }
 0x5e5   :  { %v516_v21 = vsub.f32 %v509_v9, %v515_v19  ;;  %v421_v22 = vpop.f32.mrf.mxu2  ;;  %v685_v23 = vpop.f32.mrf.mxu1 }
 0x5e6   :  { %v425_v24 = vadd.f32 %v421_v22, %v1094_v28 }
 0x5e7   :  { %v517_v25 = vmul.f32 1.442695, %v516_v21 }
 0x5e8   :  { %v430_v26 = vadd.f32 %v827_v20, %v425_v24 }
 0x5e9   :  { %849 = vpow2.f32 %v517_v25 }
 0x5ea   :  { %431 = vst.msk [vmem:[#allocation8] sm:$0xff] %vm96_vm0, %v430_v26 }
 0x5ed   :  { %v423_v27 = vpop.f32.mrf.mxu2 }
 0x5ef   :  { %v850_v29 = vpop.eup %849 }
 0x5f0   :  { %v519_v30 = vsel %vm118_vm1, %v850_v29, 0.0 }
 0x5f1   :  { %520 = vadd.xlane.f32.xlu0 %v519_v30 }
 0x5f4   :  { %v611_v31 = vpop.xlane.xlu2 %610 }
 0x5f5   :  { %v612_v32 = vsub.f32 %v605_v12, %v611_v31 }
 0x5f7   :  { %v613_v33 = vmul.f32 1.442695, %v612_v32 }
 0x5f8   :  { %525 = vrot.lane.b32.xlu1 %v1066_v43, %s973_s13 }
 0x5f9   :  { %851 = vpow2.f32 %v613_v33 }
 0x5ff   :  { %v852_v34 = vpop.eup %851 }
 0x600   :  { %v615_v28 = vsel %vm118_vm1, %v852_v34, 0.0 }
 0x601   :  { %616 = vadd.xlane.f32.xlu0 %v615_v28 }
 0x615   :  { %621 = vrot.lane.b32.xlu0 %v1066_v43, %s976_s16 }
 0x652   :  { %v689_v35 = vpop.xlane.xlu1 %688 }
 0x653   :  { %v690_v36 = vsub.f32 %v683_v17, %v689_v35 }
 0x655   :  { %v691_v37 = vmul.f32 1.442695, %v690_v36 }
 0x657   :  { %853 = vpow2.f32 %v691_v37 }
 0x65d   :  { %v854_v38 = vpop.eup %853 }
 0x65e   :  { %v693_v39 = vsel %vm118_vm1, %v854_v38, 0.0 }
 0x65f   :  { %694 = vadd.xlane.f32.xlu2 %v693_v39 }
 0x664   :  { %v521_v40 = vpop.xlane.xlu0 %520 }
 0x665   :  { %855 = vrcp.f32 %v521_v40 }
 0x66a   :  { %v526_v41 = vpop.permute.xlu1 %525 }
 0x66b   :  { %v856_v42 = vpop.eup %855  ;;  %v531_v44 = vsel %vm155_vm2, %v526_v41, 0 }
 0x66c   :  { %v523_v45 = vmul.f32 %v856_v42, %v850_v29  ;;  %540 = vmatpush.bf16.msra.mxu2 %v531_v44 }
 0x66e   :  { %v524_v46 = vpack.c.bf16 %v523_v45, %v523_v45 }
 0x670   :  { %796 = vmatmul.msk.bf16.vlgmr.msra.gmra.mxu2 %vm118_vm1, %v524_v46 }
 0x674   :  { %v617_v47 = vpop.xlane.xlu0 %616 }
 0x675   :  { %857 = vrcp.f32 %v617_v47 }
 0x677   :  { %699 = vrot.lane.b32.xlu2 %v1066_v43, %s977_s17 }
 0x67b   :  { %v858_v48 = vpop.eup %857 }
 0x67c   :  { %v619_v49 = vmul.f32 %v858_v48, %v852_v34 }
 0x67e   :  { %v620_v51 = vpack.c.bf16 %v619_v49, %v619_v49 }
 0x687   :  { %v622_v50 = vpop.permute.xlu0 %621 }
 0x688   :  { %v627_v6 = vsel %vm155_vm2, %v622_v50, 0 }
 0x689   :  { %636 = vmatpush.bf16.msrb.mxu2 %v627_v6 }
 0x68c   :  { %800 = vmatmul.msk.bf16.vlgmr.msrb.gmra.mxu2 %vm118_vm1, %v620_v51 }
 0x68d   :  { %735 = vmatpush.bf16.msra.mxu2 %v726_v4 }
 0x6d2   :  { %v695_v52 = vpop.xlane.xlu2 %694 }
 0x6d3   :  { %859 = vrcp.f32 %v695_v52 }
 0x6d9   :  { %v860_v55 = vpop.eup %859 }
 0x6da   :  { %v697_v56 = vmul.f32 %v860_v55, %v854_v38  ;;  %v700_v43 = vpop.permute.xlu2 %699 }
 0x6db   :  { %v705_v57 = vsel %vm155_vm2, %v700_v43, 0 }
 0x6dc   :  { %v698_v58 = vpack.c.bf16 %v697_v56, %v697_v56  ;;  %714 = vmatpush.bf16.msrb.mxu3 %v705_v57 }
 0x6df   :  { %803 = vmatmul.msk.bf16.vlgmr.msrb.gmra.mxu3 %vm118_vm1, %v698_v58 }
 0x6f3   :  { %v542_v61 = vpop.f32.mrf.mxu2 }
 0x6f4   :  { %v546_v62 = vpack.c.bf16 %v542_v61, %v542_v61 }
 0x6f6   :  { %797 = vmatmul.msk.bf16.vlgmr.msra.gmra.mxu0 %vm118_vm1, %v546_v62 }
 0x6fb   :  { %v544_v63 = vpop.f32.mrf.mxu2 }
 0x70f   :  { %v638_v0 = vpop.f32.mrf.mxu2 }
 0x710   :  { %v642_v1 = vpack.c.bf16 %v638_v0, %v638_v0 }
 0x712   :  { %801 = vmatmul.msk.bf16.vlgmr.msrb.gmra.mxu0 %vm118_vm1, %v642_v1 }
 0x717   :  { %v640_v2 = vpop.f32.mrf.mxu2 }
 0x762   :  { %v716_v5 = vpop.f32.mrf.mxu3 }
 0x763   :  { %v720_v7 = vpack.c.bf16 %v716_v5, %v716_v5 }
 0x765   :  { %804 = vmatmul.msk.bf16.vlgmr.msra.gmra.mxu2 %vm118_vm1, %v720_v7 }
 0x76a   :  { %v718_v8 = vpop.f32.mrf.mxu3 }
 0x773   :  { %v563_v9 = vpop.f32.mrf.mxu0 }
 0x774   :  { %v583_v11 = vadd.f32 %v1128_v15, %v563_v9 }
 0x77b   :  { %v565_v10 = vpop.f32.mrf.mxu0 }
 0x78f   :  { %v659_v12 = vpop.f32.mrf.mxu0 }
 0x790   :  { %v663_v13 = vadd.f32 %v659_v12, %v583_v11 }
 0x797   :  { %v661_v14 = vpop.f32.mrf.mxu0 }
 0x7e8   :  { %v737_v17 = vpop.f32.mrf.mxu2 }
 0x7e9   :  { %v741_v18 = vadd.f32 %v737_v17, %v663_v13 }
 0x7eb   :  { %v746_v19 = vadd.f32 %v828_v16, %v741_v18 }
 0x7ed   :  { %747 = vst.msk [vmem:[#allocation8 + $0x8] sm:$0xff] %vm96_vm0, %v746_v19 }
 0x7ee   :  { %760 = dma.vmem_to_hbm [thread:$0]  %s753_s23, 256, %s755_s26, [#allocation4], %s979_s27, %s979_s27, %s980_s28  }
 0x7f0   :  { %v739_v15 = vpop.f32.mrf.mxu2 }
 0x7f1   :  { %961 = dma.done.wait [#allocation4], 256  }
 0x7f2   :  { %962 = vsyncadd [#allocation4], 4294967040 }
 0x7f3   :  { %765 = vsyncpa [#allocation3], 1 }
 0x7f4   :  { %766 = vsyncpa [#allocation6], 1 }
 0x7f5   :  { %767 = vsyncpa [#allocation4], 1 }

</bundles_post_ra>
